<compile_context>
chip_gen: v6e
topology: v6e:2x2x1
jax: 0.10.0
libtpu: 0.0.40
codegen_flags: <defaults>
</compile_context>

<pallas_src>
import functools

import numpy as np
import jax
import jax.numpy as jnp
from jax import lax
from jax.experimental import pallas as pl
from jax.experimental.pallas import tpu as pltpu

EPS = 5.960464477539063e-08  # CustomNorm eps


def _custom_norm_kernel(x_ref, gamma_ref, o_ref):
    # x_ref block: (block_rows, d); gamma_ref: (1, d) f32 with sqrt(d) folded in.
    x = x_ref[...].astype(jnp.float32)                       # (block_rows, d)

    # Per-row sum of squares in f32.
    sumsq = jnp.sum(x * x, axis=-1, keepdims=True)           # (block_rows, 1)

    # 1 / max(||x||, eps) == rsqrt(max(sumsq, eps^2)): one EUP op per row,
    # no wide divides, no sqrt->max->recip dependency chain.
    inv = lax.rsqrt(jnp.maximum(sumsq, EPS * EPS))           # (block_rows, 1)

    # Two full-width multiplies total: row-broadcast inv, lane-broadcast gamma.
    out = (x * inv) * gamma_ref[...]                         # (block_rows, d)
    o_ref[...] = out.astype(o_ref.dtype)


def _pick_block_rows(total_rows, d, dtype):
    """Largest sublane-aligned row tile within a conservative VMEM budget."""
    itemsize = jnp.dtype(dtype).itemsize
    # 16-bit dtypes pack 16 rows per sublane tile; f32 packs 8.
    align = 16 if itemsize < 4 else 8
    # VMEM cost of the streamed blocks: (in + out) x double-buffered.
    per_row_bytes = 4 * d * itemsize
    budget = 8 * 1024 * 1024  # ~8 MiB -> safe under 16/32 MiB scoped defaults (v5e/v6e/v7x)
    max_rows = max(align, (budget // per_row_bytes) // align * align)
    block_rows = min(1024, max_rows)
    # Never larger than the (sublane-padded) total row count.
    padded_total = -(-total_rows // align) * align
    block_rows = min(block_rows, padded_total)
    return max(align, (block_rows // align) * align)


def custom_norm(x, gamma, *, block_rows=None):
    """CustomNorm forward for x of shape (..., dim)."""
    orig_shape = x.shape
    d = orig_shape[-1]
    total_rows = int(np.prod(orig_shape[:-1]))

    if block_rows is None:
        block_rows = _pick_block_rows(total_rows, d, x.dtype)

    # Flatten leading dims: 1-D grid over independent row tiles (even 2-TC
    # split on v7x regardless of batch size).
    x2 = x.reshape(total_rows, d)
    # Fold the sqrt(dim) scale into gamma once, host-side, in f32.
    gamma_scaled = (gamma.astype(jnp.float32) * (float(d) ** 0.5)).reshape(1, d)

    # TODO(synk): for production dims < 128 a lane-dense repack (G=128//d rows
    # per lane tile) would lift store lane utilization; real BS-RoFormer dims
    # (384/512) are already lane-dense so no action taken here.
    out = pl.pallas_call(
        _custom_norm_kernel,
        out_shape=jax.ShapeDtypeStruct((total_rows, d), x.dtype),
        grid=(pl.cdiv(total_rows, block_rows),),
        in_specs=[
            pl.BlockSpec((block_rows, d), lambda i: (i, 0)),   # x tile
            pl.BlockSpec((1, d), lambda i: (0, 0)),            # gamma (constant)
        ],
        out_specs=pl.BlockSpec((block_rows, d), lambda i: (i, 0)),
        compiler_params=pltpu.CompilerParams(
            dimension_semantics=("parallel",)),
    )(x2, gamma_scaled)
    return out.reshape(orig_shape)


def _reference_forward(x, gamma):
    """Pure-JAX reference mirroring the PyTorch CustomNorm module."""
    d = x.shape[-1]
    xf = x.astype(jnp.float32)
    l2 = jnp.linalg.norm(xf, axis=-1, keepdims=True)
    denom = jnp.maximum(l2, EPS)
    out = xf / denom * (float(d) ** 0.5) * gamma.astype(jnp.float32)
    return out.astype(x.dtype)


if __name__ == "__main__":
    # Small shapes consistent with the module: batch=2, seq=16, dim=32.
    B, N, DIM = 2, 16, 32

    key = jax.random.PRNGKey(0)
    k_x, k_g = jax.random.split(key, 2)

    x = jax.random.normal(k_x, (B, N, DIM), dtype=jnp.float32)
    # Exercise the eps clamp branch with an all-zero row.
    x = x.at[0, 3].set(0.0)
    gamma = 1.0 + 0.01 * jax.random.normal(k_g, (DIM,), dtype=jnp.float32)

    # f32 path.
    out = jax.block_until_ready(custom_norm(x, gamma))
    ref = _reference_forward(x, gamma)
    np.testing.assert_allclose(np.asarray(out), np.asarray(ref),
                               rtol=1e-5, atol=1e-5)

    # bf16 input path (f32 internal math, bf16 store).
    xb = x.astype(jnp.bfloat16)
    out_b = jax.block_until_ready(custom_norm(xb, gamma))
    ref_b = _reference_forward(xb, gamma)
    np.testing.assert_allclose(np.asarray(out_b).astype(np.float32),
                               np.asarray(ref_b).astype(np.float32),
                               rtol=2e-2, atol=2e-2)

    # fp16 input path (module is *_fp16): f32 internal math, fp16 store.
    xh = x.astype(jnp.float16)
    out_h = jax.block_until_ready(custom_norm(xh, gamma))
    ref_h = _reference_forward(xh, gamma)
    np.testing.assert_allclose(np.asarray(out_h).astype(np.float32),
                               np.asarray(ref_h).astype(np.float32),
                               rtol=2e-3, atol=2e-3)

    # Non-divisible sequence length exercises the cdiv / partial-block path.
    k_x2 = jax.random.split(k_x)[0]
    x_odd = jax.random.normal(k_x2, (B, 13, DIM), dtype=jnp.float32)
    out_odd = jax.block_until_ready(custom_norm(x_odd, gamma))
    ref_odd = _reference_forward(x_odd, gamma)
    np.testing.assert_allclose(np.asarray(out_odd), np.asarray(ref_odd),
                               rtol=1e-5, atol=1e-5)

    print("KERNEL_OK")
</pallas_src>

<mosaic_0001>
module attributes {stable_mosaic.version = 11 : i64} {
  func.func @_custom_norm_kernel(%arg0: i32, %arg1: memref<32x32xf32, #tpu.memory_space<vmem>>, %arg2: memref<1x32xf32, #tpu.memory_space<vmem>>, %arg3: memref<32x32xf32, #tpu.memory_space<vmem>>) attributes {dimension_semantics = [#tpu.dimension_semantics<parallel>], iteration_bounds = array<i64: 1>, scalar_prefetch = 0 : i64, scratch_operands = 0 : i64, tpu.core_type = #tpu.core_type<tc>, window_params = [{transform_indices = @transform_0, window_bounds = array<i64: 32, 32>}, {pipeline_mode = #tpu.pipeline_mode<synchronous>, transform_indices = @transform_1, window_bounds = array<i64: 1, 32>}, {transform_indices = @transform_2, window_bounds = array<i64: 32, 32>}]} {
    %c0 = arith.constant 0 : index
    %c0_0 = arith.constant 0 : index
    %0 = vector.load %arg1[%c0, %c0_0] : memref<32x32xf32, #tpu.memory_space<vmem>>, vector<32x32xf32>
    %1 = arith.mulf %0, %0 : vector<32x32xf32>
    %cst = arith.constant dense<0.000000e+00> : vector<32xf32>
    %2 = vector.multi_reduction <add>, %1, %cst [1] : vector<32x32xf32> to vector<32xf32>
    %3 = vector.shape_cast %2 : vector<32xf32> to vector<32x1xf32>
    %cst_1 = arith.constant 3.55271368E-15 : f32
    %4 = vector.broadcast %cst_1 : f32 to vector<32x1xf32>
    %5 = arith.maximumf %3, %4 : vector<32x1xf32>
    %6 = math.rsqrt %5 : vector<32x1xf32>
    %7 = vector.broadcast %6 : vector<32x1xf32> to vector<32x32xf32>
    %8 = arith.mulf %0, %7 : vector<32x32xf32>
    %c0_2 = arith.constant 0 : index
    %c0_3 = arith.constant 0 : index
    %9 = vector.load %arg2[%c0_2, %c0_3] : memref<1x32xf32, #tpu.memory_space<vmem>>, vector<1x32xf32>
    %10 = vector.broadcast %9 : vector<1x32xf32> to vector<32x32xf32>
    %11 = arith.mulf %8, %10 : vector<32x32xf32>
    %c0_4 = arith.constant 0 : index
    %c0_5 = arith.constant 0 : index
    %12 = vector.load %arg3[%c0_4, %c0_5] : memref<32x32xf32, #tpu.memory_space<vmem>>, vector<32x32xf32>
    tpu.vector_store %arg3[%c0_4, %c0_5], %11 {strides = array<i32>} : memref<32x32xf32, #tpu.memory_space<vmem>>, vector<32x32xf32>,
    return
  }
  func.func @transform_0(%arg0: i32) -> (i32, i32) {
    %c0_i32 = arith.constant 0 : i32
    %c0_i32_0 = arith.constant 0 : i32
    return %arg0, %c0_i32 : i32, i32
  }
  func.func @transform_1(%arg0: i32) -> (i32, i32) {
    %c0_i32 = arith.constant 0 : i32
    %c0_i32_0 = arith.constant 0 : i32
    %c0_i32_1 = arith.constant 0 : i32
    return %c0_i32, %c0_i32_0 : i32, i32
  }
  func.func @transform_2(%arg0: i32) -> (i32, i32) {
    %c0_i32 = arith.constant 0 : i32
    %c0_i32_0 = arith.constant 0 : i32
    return %arg0, %c0_i32 : i32, i32
  }
}

</mosaic_0001>

<bundles_post_ra>
// kernel: tpu_custom_call.1
= control target key start
LH: loop header
LB: loop body
LE: loop exit
PB: predicated region body
PF: predicated region fallthrough
CT: control target
= control target key end

     0   :  { %7 = vsyncpa [#allocation3], 0  ;;  %s190_s0 = inlined_call_operand.hbm [shape: f32[32,32], index: 0, kind: input, shape index: {}]   ;;  %s191_s1 = inlined_call_operand.vmem [shape: f32[1,32], index: 1, kind: input, shape index: {}]   ;;  %s192_s2 = inlined_call_operand.hbm [shape: f32[32,32], index: 2, kind: output, shape index: {}]  }
   0x1   :  { %8 = vsyncpa [#allocation4], 0  ;;  %s148_s9 = smov [#allocation2]  }
   0x2   :  { %s14_s10 = sshll.u32 %s148_s9, 4  ;;  %s15_s10 = int_to_ptr.vmem [resolvable:$true] %s14_s10 }
   0x3   :  { %s112_s11 = scalar_lea.vmem %s15_s10, 512  ;;  %p117_p1 = scmp.lt.s32.totalorder %s15_s10, %s15_s10 }
   0x4   :  { %p113_p0 = scmp.ne.s32.totalorder %s15_s10, %s112_s11  ;;  %p118_p2 = scmp.lt.s32.totalorder %s112_s11, %s112_s11 }
   0x6   :  { %p119_p3 = por %p118_p2, %p117_p1 }
   0x8   :  { %p120_p4 = pnand %p119_p3, %p113_p0 }
   0xa   :  { %123 = shalt.err (!%p120_p4)
}
   0xb   :  { %s149_s12 = smov 128   ;;  %s150_s13 = smov 8  }
   0xc   :  { %20 = dma.hbm_to_vmem [thread:$0]  %s190_s0, 512, %s15_s10, [#allocation3], %s149_s12, %s149_s12, %s150_s13  }
   0xd   :  { %144 = dma.done.wait [#allocation3], 512  }
   0xe   :  { %145 = vsyncadd [#allocation3], 4294966784  ;;  %v28_v0 = vld [vmem:[#allocation2 + $0x10] sm:$0xff]  ;;  %vm34_vm0 = vcmask 261120   ;;  %v26_v1 = vld [vmem:[#allocation2] sm:$0xff]  ;;  %s151_s17 = smov [#allocation5]  }
   0xf   :  { %v29_v2 = vld [vmem:[#allocation2 + $0x18] sm:$0xff]  ;;  %v32_v3 = vmul.f32 %v28_v0, %v28_v0  ;;  %v30_v4 = vmul.f32 %v26_v1, %v26_v1  ;;  %v27_v6 = vld [vmem:[#allocation2 + $0x8] sm:$0xff]  ;;  %v91_v21 = vld [vmem:[%s191_s1] ss:$0 sm:$0xff]  ;;  %s79_s18 = sshll.u32 %s151_s17, 4  ;;  %s80_s18 = int_to_ptr.vmem [resolvable:$true] %s79_s18 }
  0x10   :  { %v33_v5 = vmul.f32 %v29_v2, %v29_v2  ;;  %v31_v7 = vmul.f32 %v27_v6, %v27_v6  ;;  %s124_s1 = scalar_lea.vmem %s80_s18, 512  ;;  %p129_p6 = scmp.lt.s32.totalorder %s80_s18, %s80_s18 }
  0x11   :  { %v41_v8 = vsel %vm34_vm0, %v32_v3, 0.0  ;;  %v35_v9 = vsel %vm34_vm0, %v30_v4, 0.0  ;;  %p125_p5 = scmp.ne.s32.totalorder %s80_s18, %s124_s1  ;;  %p130_p7 = scmp.lt.s32.totalorder %s124_s1, %s124_s1 }
  0x12   :  { %42 = vadd.xlane.f32.xlu1 %v41_v8  ;;  %36 = vadd.xlane.f32.xlu0 %v35_v9  ;;  %v44_v10 = vsel %vm34_vm0, %v33_v5, 0.0  ;;  %v38_v11 = vsel %vm34_vm0, %v31_v7, 0.0 }
  0x13   :  { %p131_p8 = por %p130_p7, %p129_p6 }
  0x15   :  { %p132_p9 = pnand %p131_p8, %p125_p5 }
  0x16   :  { %45 = vadd.xlane.f32.xlu1 %v44_v10  ;;  %39 = vadd.xlane.f32.xlu0 %v38_v11 }
  0x9b   :  { %v43_v12 = vpop.xlane.xlu1 %42  ;;  %v37_v13 = vpop.xlane.xlu0 %36 }
  0x9c   :  { %v49_v14 = vmax.f32 %v43_v12, 3.5527137e-15  ;;  %v47_v15 = vmax.f32 %v37_v13, 3.5527137e-15 }
  0x9e   :  { %96 = vrsqrt.f32 %v49_v14 }
  0x9f   :  { %98 = vrsqrt.f32 %v47_v15  ;;  %v46_v16 = vpop.xlane.xlu1 %45  ;;  %v40_v17 = vpop.xlane.xlu0 %39 }
  0xa0   :  { %v50_v18 = vmax.f32 %v46_v16, 3.5527137e-15  ;;  %v48_v19 = vmax.f32 %v40_v17, 3.5527137e-15 }
  0xa2   :  { %100 = vrsqrt.f32 %v50_v18 }
  0xa3   :  { %102 = vrsqrt.f32 %v48_v19 }
  0xab   :  { %v97_v20 = vpop.eup %96 }
  0xac   :  { %v99_v22 = vpop.eup %98  ;;  %v57_v23 = vmul.f32 %v97_v20, %v28_v0 }
  0xad   :  { %v55_v24 = vmul.f32 %v99_v22, %v26_v1 }
  0xae   :  { %v68_v25 = vmul.f32 %v91_v21, %v57_v23 }
  0xaf   :  { %v101_v26 = vpop.eup %100  ;;  %v66_v27 = vmul.f32 %v91_v21, %v55_v24 }
  0xb0   :  { %v103_v28 = vpop.eup %102  ;;  %v58_v29 = vmul.f32 %v101_v26, %v29_v2  ;;  %72 = vst.msk [vmem:[#allocation5 + $0x10] sm:$0xff] %vm34_vm0, %v68_v25 }
  0xb1   :  { %v56_v30 = vmul.f32 %v103_v28, %v27_v6  ;;  %70 = vst.msk [vmem:[#allocation5] sm:$0xff] %vm34_vm0, %v66_v27 }
  0xb2   :  { %v69_v31 = vmul.f32 %v91_v21, %v58_v29 }
  0xb3   :  { %v67_v32 = vmul.f32 %v91_v21, %v56_v30 }
  0xb4   :  { %73 = vst.msk [vmem:[#allocation5 + $0x18] sm:$0xff] %vm34_vm0, %v69_v31 }
  0xb5   :  { %71 = vst.msk [vmem:[#allocation5 + $0x8] sm:$0xff] %vm34_vm0, %v67_v32 }
  0xb6   :  { %135 = shalt.err (!%p132_p9)
}
  0xb7   :  { %85 = dma.vmem_to_hbm [thread:$0]  %s80_s18, 512, %s192_s2, [#allocation4], %s149_s12, %s149_s12, %s150_s13  }
  0xb8   :  { %146 = dma.done.wait [#allocation4], 512  }
  0xb9   :  { %147 = vsyncadd [#allocation4], 4294966784 }
  0xba   :  { %89 = vsyncpa [#allocation3], 1 }
  0xbb   :  { %90 = vsyncpa [#allocation4], 1 }

</bundles_post_ra>
